<compile_context>
chip_gen: v6e
topology: v6e:2x2x1
jax: 0.10.0
libtpu: 0.0.40
codegen_flags: <defaults>
</compile_context>

<pallas_src>
import math
import jax
import jax.numpy as jnp
from jax import lax
from jax.experimental import pallas as pl
from jax.experimental.pallas import tpu as pltpu


def _mha_flash_kernel(scale):
    """Fused kernel over grid (batch, q-tile, head, kv-tile):
    head-sliced projections + online-softmax attention + accumulated output proj."""

    def kernel(q_ref, k_ref, v_ref, wqT_ref, wkT_ref, wvT_ref, woT_ref, o_ref,
               q_scr, m_scr, l_scr, acc_scr, out_scr):
        hd = pl.program_id(2)
        ki = pl.program_id(3)
        n_heads = pl.num_programs(2)
        n_kv = pl.num_programs(3)

        mm_dtype = k_ref.dtype  # bf16 in/weights -> bf16 MXU operands (f32 accumulate)

        # ---- init -----------------------------------------------------------
        @pl.when(jnp.logical_and(hd == 0, ki == 0))
        def _init_out():
            out_scr[...] = jnp.zeros_like(out_scr)

        @pl.when(ki == 0)
        def _init_head():
            # Per-head Q projection; 1/sqrt(d_k) folded into Q once.
            q_scr[...] = jnp.dot(q_ref[0], wqT_ref[0],
                                 preferred_element_type=jnp.float32) * scale
            m_scr[...] = jnp.full_like(m_scr, -jnp.inf)
            l_scr[...] = jnp.zeros_like(l_scr)
            acc_scr[...] = jnp.zeros_like(acc_scr)

        # ---- project this K/V tile for the current head (pre-transposed W) ---
        kh = jnp.dot(k_ref[0], wkT_ref[0], preferred_element_type=jnp.float32)  # [tk, d_k]
        vh = jnp.dot(v_ref[0], wvT_ref[0], preferred_element_type=jnp.float32)  # [tk, d_k]

        # ---- scores + online softmax (f32 math) ------------------------------
        # Contract the d_k dims of Q and K directly -> no explicit K transpose.
        s = lax.dot_general(q_scr[...].astype(mm_dtype), kh.astype(mm_dtype),
                            (((1,), (1,)), ((), ())),
                            preferred_element_type=jnp.float32)                 # [tq, tk]
        # NOTE: mask intentionally not applied (reference masked_fill is not in-place).
        m_prev = m_scr[...]
        m_new = jnp.maximum(m_prev, s.max(axis=-1, keepdims=True))
        alpha = jnp.exp(m_prev - m_new)
        p = jnp.exp(s - m_new)                                                  # [tq, tk]
        l_scr[...] = alpha * l_scr[...] + p.sum(axis=-1, keepdims=True)
        acc_scr[...] = alpha * acc_scr[...] + jnp.dot(
            p.astype(mm_dtype), vh.astype(mm_dtype),
            preferred_element_type=jnp.float32)                                 # [tq, d_k]
        m_scr[...] = m_new

        # ---- per-head epilogue: fold this head's output projection -----------
        last_kv = ki == n_kv - 1

        @pl.when(last_kv)
        def _accumulate_head():
            ctx = acc_scr[...] * pl.reciprocal(l_scr[...], approx=True)         # [tq, d_k]
            out_scr[...] += jnp.dot(ctx.astype(mm_dtype), woT_ref[0],
                                    preferred_element_type=jnp.float32)         # [tq, D]

        @pl.when(jnp.logical_and(last_kv, hd == n_heads - 1))
        def _write_out():
            o_ref[0] = out_scr[...].astype(o_ref.dtype)

    return kernel


def multi_head_attention(q, k, v, mask, params, *, h, tq=None, tk=None):
    """Pallas-backed forward of MultiHeadAttentionBlock.

    `mask` is accepted but unused (the reference's masked_fill result is
    discarded); dropout is identity at inference.
    """
    del mask
    B, S, D = q.shape
    assert D % h == 0, "d_model is not divisible by h"
    d_k = D // h

    # Flash-style sequence tiling: VMEM footprint independent of S.
    if tq is None:
        tq = S if S <= 128 else 128
    if tk is None:
        tk = S if S <= 128 else 128
    assert S % tq == 0 and S % tk == 0, "S must be divisible by the tile sizes"

    scale = 1.0 / math.sqrt(d_k)

    # Pre-transpose + head-split weights once at trace time (outside the kernel):
    #   wqT/wkT/wvT[hd] : [D, d_k]   (x @ wT == per-head projection, no in-kernel .T)
    #   woT[hd]         : [d_k, D]   (per-head rows of W_o.T, summed over heads)
    wqT = params["w_q"].T.reshape(D, h, d_k).transpose(1, 0, 2)
    wkT = params["w_k"].T.reshape(D, h, d_k).transpose(1, 0, 2)
    wvT = params["w_v"].T.reshape(D, h, d_k).transpose(1, 0, 2)
    woT = params["w_o"].T.reshape(h, d_k, D)

    # TODO(synk): for very long S with multiple q tiles, pre-project K/V once in a
    # separate pass instead of re-projecting each kv tile per q tile.

    grid = (B, S // tq, h, S // tk)

    q_spec = pl.BlockSpec((1, tq, D), lambda b, qi, hd, ki: (b, qi, 0))
    kv_spec = pl.BlockSpec((1, tk, D), lambda b, qi, hd, ki: (b, ki, 0))
    w_in_spec = pl.BlockSpec((1, D, d_k), lambda b, qi, hd, ki: (hd, 0, 0))
    w_out_spec = pl.BlockSpec((1, d_k, D), lambda b, qi, hd, ki: (hd, 0, 0))
    o_spec = pl.BlockSpec((1, tq, D), lambda b, qi, hd, ki: (b, qi, 0))

    out = pl.pallas_call(
        _mha_flash_kernel(scale),
        out_shape=jax.ShapeDtypeStruct((B, S, D), q.dtype),
        grid_spec=pltpu.PrefetchScalarGridSpec(
            num_scalar_prefetch=0,
            grid=grid,
            in_specs=[q_spec, kv_spec, kv_spec,
                      w_in_spec, w_in_spec, w_in_spec, w_out_spec],
            out_specs=o_spec,
            scratch_shapes=[
                pltpu.VMEM((tq, d_k), jnp.float32),  # q_scr   (scaled per-head Q)
                pltpu.VMEM((tq, 1), jnp.float32),    # m_scr   (running row max)
                pltpu.VMEM((tq, 1), jnp.float32),    # l_scr   (running row sum)
                pltpu.VMEM((tq, d_k), jnp.float32),  # acc_scr (running P @ V)
                pltpu.VMEM((tq, D), jnp.float32),    # out_scr (output-proj accumulator)
            ],
        ),
        compiler_params=pltpu.CompilerParams(
            dimension_semantics=("parallel", "parallel", "arbitrary", "arbitrary"),
            vmem_limit_bytes=48 * 1024 * 1024,
        ),
    )(q, k, v, wqT, wkT, wvT, woT)
    return out


def _reference(q, k, v, params, h):
    """Pure-JAX reference for a sanity check."""
    B, S, D = q.shape
    d_k = D // h
    Q = q @ params["w_q"].T
    K = k @ params["w_k"].T
    V = v @ params["w_v"].T

    def split(x):
        return x.reshape(B, S, h, d_k).transpose(0, 2, 1, 3)  # [B, h, S, d_k]

    Q, K, V = split(Q), split(K), split(V)
    scores = jnp.einsum("bhqd,bhkd->bhqk", Q, K) / math.sqrt(d_k)
    p = jax.nn.softmax(scores, axis=-1)
    ctx = jnp.einsum("bhqk,bhkd->bhqd", p, V)
    ctx = ctx.transpose(0, 2, 1, 3).reshape(B, S, D)
    return ctx @ params["w_o"].T


if __name__ == "__main__":
    # Small shapes consistent with the module: batch=2, seq=8, d_model=32, h=4.
    B, S, D, H = 2, 8, 32, 4
    key = jax.random.PRNGKey(0)
    kq, kk, kv_, k1, k2, k3, k4 = jax.random.split(key, 7)

    q = jax.random.normal(kq, (B, S, D), dtype=jnp.float32)
    k = jax.random.normal(kk, (B, S, D), dtype=jnp.float32)
    v = jax.random.normal(kv_, (B, S, D), dtype=jnp.float32)

    # Deterministic parameter init (PyTorch Linear weight shape: [out, in]).
    bound = 1.0 / math.sqrt(D)
    params = {
        "w_q": jax.random.uniform(k1, (D, D), jnp.float32, -bound, bound),
        "w_k": jax.random.uniform(k2, (D, D), jnp.float32, -bound, bound),
        "w_v": jax.random.uniform(k3, (D, D), jnp.float32, -bound, bound),
        "w_o": jax.random.uniform(k4, (D, D), jnp.float32, -bound, bound),
    }

    out = multi_head_attention(q, k, v, None, params, h=H)
    out = jax.block_until_ready(out)

    ref = _reference(q, k, v, params, H)
    assert out.shape == (B, S, D)
    # Tolerance accounts for the EUP approximate reciprocal in the softmax normalization.
    assert jnp.allclose(out, ref, atol=2e-3, rtol=2e-3), "mismatch vs pure-JAX reference"

    print("KERNEL_OK")
</pallas_src>

<mosaic_0001>
module attributes {stable_mosaic.version = 11 : i64} {
  func.func @kernel(%arg0: i32, %arg1: i32, %arg2: i32, %arg3: i32, %arg4: memref<1x8x32xf32, #tpu.memory_space<vmem>>, %arg5: memref<1x8x32xf32, #tpu.memory_space<vmem>>, %arg6: memref<1x8x32xf32, #tpu.memory_space<vmem>>, %arg7: memref<1x32x8xf32, #tpu.memory_space<vmem>>, %arg8: memref<1x32x8xf32, #tpu.memory_space<vmem>>, %arg9: memref<1x32x8xf32, #tpu.memory_space<vmem>>, %arg10: memref<1x8x32xf32, #tpu.memory_space<vmem>>, %arg11: memref<1x8x32xf32, #tpu.memory_space<vmem>>, %arg12: memref<8x8xf32, #tpu.memory_space<vmem>>, %arg13: memref<8x1xf32, #tpu.memory_space<vmem>>, %arg14: memref<8x1xf32, #tpu.memory_space<vmem>>, %arg15: memref<8x8xf32, #tpu.memory_space<vmem>>, %arg16: memref<8x32xf32, #tpu.memory_space<vmem>>) attributes {dimension_semantics = [#tpu.dimension_semantics<parallel>, #tpu.dimension_semantics<parallel>, #tpu.dimension_semantics<arbitrary>, #tpu.dimension_semantics<arbitrary>], iteration_bounds = array<i64: 2, 1, 4, 1>, scalar_prefetch = 0 : i64, scratch_operands = 5 : i64, tpu.core_type = #tpu.core_type<tc>, window_params = [{transform_indices = @transform_0, window_bounds = array<i64: 1, 8, 32>}, {transform_indices = @transform_1, window_bounds = array<i64: 1, 8, 32>}, {transform_indices = @transform_2, window_bounds = array<i64: 1, 8, 32>}, {transform_indices = @transform_3, window_bounds = array<i64: 1, 32, 8>}, {transform_indices = @transform_4, window_bounds = array<i64: 1, 32, 8>}, {transform_indices = @transform_5, window_bounds = array<i64: 1, 32, 8>}, {transform_indices = @transform_6, window_bounds = array<i64: 1, 8, 32>}, {transform_indices = @transform_7, window_bounds = array<i64: 1, 8, 32>}]} {
    %c0_i32 = arith.constant 0 : i32
    %0 = arith.cmpi eq, %arg2, %c0_i32 : i32
    %c0_i32_0 = arith.constant 0 : i32
    %1 = arith.cmpi eq, %arg3, %c0_i32_0 : i32
    %2 = arith.andi %0, %1 : i1
    %3 = arith.extui %2 : i1 to i32
    %c0_i32_1 = arith.constant 0 : i32
    %4 = arith.cmpi ne, %3, %c0_i32_1 : i32
    scf.if %4 {
      %cst_37 = arith.constant 0.000000e+00 : f32
      %49 = vector.broadcast %cst_37 : f32 to vector<8x32xf32>
      %c0_38 = arith.constant 0 : index
      %c0_39 = arith.constant 0 : index
      %50 = vector.load %arg16[%c0_38, %c0_39] : memref<8x32xf32, #tpu.memory_space<vmem>>, vector<8x32xf32>
      tpu.vector_store %arg16[%c0_38, %c0_39], %49 {strides = array<i32>} : memref<8x32xf32, #tpu.memory_space<vmem>>, vector<8x32xf32>,
    } else {
    }
    %c0_i32_2 = arith.constant 0 : i32
    %5 = arith.cmpi eq, %arg3, %c0_i32_2 : i32
    %6 = arith.extui %5 : i1 to i32
    %c0_i32_3 = arith.constant 0 : i32
    %7 = arith.cmpi ne, %6, %c0_i32_3 : i32
    scf.if %7 {
      %c0_37 = arith.constant 0 : index
      %c0_38 = arith.constant 0 : index
      %c0_39 = arith.constant 0 : index
      %49 = vector.load %arg4[%c0_37, %c0_38, %c0_39] : memref<1x8x32xf32, #tpu.memory_space<vmem>>, vector<1x8x32xf32>
      %50 = vector.shape_cast %49 : vector<1x8x32xf32> to vector<8x32xf32>
      %c0_40 = arith.constant 0 : index
      %c0_41 = arith.constant 0 : index
      %c0_42 = arith.constant 0 : index
      %51 = vector.load %arg7[%c0_40, %c0_41, %c0_42] : memref<1x32x8xf32, #tpu.memory_space<vmem>>, vector<1x32x8xf32>
      %52 = vector.shape_cast %51 : vector<1x32x8xf32> to vector<32x8xf32>
      %cst_43 = arith.constant dense<0.000000e+00> : vector<8x8xf32>
      %53 = tpu.matmul %50, %52, %cst_43 {dimension_numbers = #tpu.dot_dimension_numbers<[1], [0], [0], [1], [0, 0, 1, 1], [], []>} : vector<8x32xf32>, vector<32x8xf32>, vector<8x8xf32> -> vector<8x8xf32>
      %cst_44 = arith.constant 0.353553385 : f32
      %54 = vector.broadcast %cst_44 : f32 to vector<8x8xf32>
      %55 = arith.mulf %53, %54 : vector<8x8xf32>
      %c0_45 = arith.constant 0 : index
      %c0_46 = arith.constant 0 : index
      %56 = vector.load %arg12[%c0_45, %c0_46] : memref<8x8xf32, #tpu.memory_space<vmem>>, vector<8x8xf32>
      tpu.vector_store %arg12[%c0_45, %c0_46], %55 {strides = array<i32>} : memref<8x8xf32, #tpu.memory_space<vmem>>, vector<8x8xf32>,
      %cst_47 = arith.constant 0xFF800000 : f32
      %57 = vector.broadcast %cst_47 : f32 to vector<8x1xf32>
      %c0_48 = arith.constant 0 : index
      %c0_49 = arith.constant 0 : index
      %58 = vector.load %arg13[%c0_48, %c0_49] : memref<8x1xf32, #tpu.memory_space<vmem>>, vector<8x1xf32>
      tpu.vector_store %arg13[%c0_48, %c0_49], %57 {strides = array<i32>} : memref<8x1xf32, #tpu.memory_space<vmem>>, vector<8x1xf32>,
      %cst_50 = arith.constant 0.000000e+00 : f32
      %59 = vector.broadcast %cst_50 : f32 to vector<8x1xf32>
      %c0_51 = arith.constant 0 : index
      %c0_52 = arith.constant 0 : index
      %60 = vector.load %arg14[%c0_51, %c0_52] : memref<8x1xf32, #tpu.memory_space<vmem>>, vector<8x1xf32>
      tpu.vector_store %arg14[%c0_51, %c0_52], %59 {strides = array<i32>} : memref<8x1xf32, #tpu.memory_space<vmem>>, vector<8x1xf32>,
      %cst_53 = arith.constant 0.000000e+00 : f32
      %61 = vector.broadcast %cst_53 : f32 to vector<8x8xf32>
      %c0_54 = arith.constant 0 : index
      %c0_55 = arith.constant 0 : index
      %62 = vector.load %arg15[%c0_54, %c0_55] : memref<8x8xf32, #tpu.memory_space<vmem>>, vector<8x8xf32>
      tpu.vector_store %arg15[%c0_54, %c0_55], %61 {strides = array<i32>} : memref<8x8xf32, #tpu.memory_space<vmem>>, vector<8x8xf32>,
    } else {
    }
    %c0 = arith.constant 0 : index
    %c0_4 = arith.constant 0 : index
    %c0_5 = arith.constant 0 : index
    %8 = vector.load %arg5[%c0, %c0_4, %c0_5] : memref<1x8x32xf32, #tpu.memory_space<vmem>>, vector<1x8x32xf32>
    %9 = vector.shape_cast %8 : vector<1x8x32xf32> to vector<8x32xf32>
    %c0_6 = arith.constant 0 : index
    %c0_7 = arith.constant 0 : index
    %c0_8 = arith.constant 0 : index
    %10 = vector.load %arg8[%c0_6, %c0_7, %c0_8] : memref<1x32x8xf32, #tpu.memory_space<vmem>>, vector<1x32x8xf32>
    %11 = vector.shape_cast %10 : vector<1x32x8xf32> to vector<32x8xf32>
    %cst = arith.constant dense<0.000000e+00> : vector<8x8xf32>
    %12 = tpu.matmul %9, %11, %cst {dimension_numbers = #tpu.dot_dimension_numbers<[1], [0], [0], [1], [0, 0, 1, 1], [], []>} : vector<8x32xf32>, vector<32x8xf32>, vector<8x8xf32> -> vector<8x8xf32>
    %c0_9 = arith.constant 0 : index
    %c0_10 = arith.constant 0 : index
    %c0_11 = arith.constant 0 : index
    %13 = vector.load %arg6[%c0_9, %c0_10, %c0_11] : memref<1x8x32xf32, #tpu.memory_space<vmem>>, vector<1x8x32xf32>
    %14 = vector.shape_cast %13 : vector<1x8x32xf32> to vector<8x32xf32>
    %c0_12 = arith.constant 0 : index
    %c0_13 = arith.constant 0 : index
    %c0_14 = arith.constant 0 : index
    %15 = vector.load %arg9[%c0_12, %c0_13, %c0_14] : memref<1x32x8xf32, #tpu.memory_space<vmem>>, vector<1x32x8xf32>
    %16 = vector.shape_cast %15 : vector<1x32x8xf32> to vector<32x8xf32>
    %cst_15 = arith.constant dense<0.000000e+00> : vector<8x8xf32>
    %17 = tpu.matmul %14, %16, %cst_15 {dimension_numbers = #tpu.dot_dimension_numbers<[1], [0], [0], [1], [0, 0, 1, 1], [], []>} : vector<8x32xf32>, vector<32x8xf32>, vector<8x8xf32> -> vector<8x8xf32>
    %c0_16 = arith.constant 0 : index
    %c0_17 = arith.constant 0 : index
    %18 = vector.load %arg12[%c0_16, %c0_17] : memref<8x8xf32, #tpu.memory_space<vmem>>, vector<8x8xf32>
    %cst_18 = arith.constant dense<0.000000e+00> : vector<8x8xf32>
    %19 = tpu.matmul %18, %12, %cst_18 {dimension_numbers = #tpu.dot_dimension_numbers<[1], [1], [0], [0], [0, 0, 1, 0], [], []>} : vector<8x8xf32>, vector<8x8xf32>, vector<8x8xf32> -> vector<8x8xf32>
    %c0_19 = arith.constant 0 : index
    %c0_20 = arith.constant 0 : index
    %20 = vector.load %arg13[%c0_19, %c0_20] : memref<8x1xf32, #tpu.memory_space<vmem>>, vector<8x1xf32>
    %cst_21 = arith.constant dense<0xFF800000> : vector<8xf32>
    %21 = vector.multi_reduction <maximumf>, %19, %cst_21 [1] : vector<8x8xf32> to vector<8xf32>
    %22 = vector.shape_cast %21 : vector<8xf32> to vector<8x1xf32>
    %23 = arith.maximumf %20, %22 : vector<8x1xf32>
    %24 = arith.subf %20, %23 : vector<8x1xf32>
    %25 = math.exp %24 : vector<8x1xf32>
    %26 = vector.broadcast %23 : vector<8x1xf32> to vector<8x8xf32>
    %27 = arith.subf %19, %26 : vector<8x8xf32>
    %28 = math.exp %27 : vector<8x8xf32>
    %c0_22 = arith.constant 0 : index
    %c0_23 = arith.constant 0 : index
    %29 = vector.load %arg14[%c0_22, %c0_23] : memref<8x1xf32, #tpu.memory_space<vmem>>, vector<8x1xf32>
    %30 = arith.mulf %25, %29 : vector<8x1xf32>
    %cst_24 = arith.constant dense<0.000000e+00> : vector<8xf32>
    %31 = vector.multi_reduction <add>, %28, %cst_24 [1] : vector<8x8xf32> to vector<8xf32>
    %32 = vector.shape_cast %31 : vector<8xf32> to vector<8x1xf32>
    %33 = arith.addf %30, %32 : vector<8x1xf32>
    %c0_25 = arith.constant 0 : index
    %c0_26 = arith.constant 0 : index
    %34 = vector.load %arg14[%c0_25, %c0_26] : memref<8x1xf32, #tpu.memory_space<vmem>>, vector<8x1xf32>
    tpu.vector_store %arg14[%c0_25, %c0_26], %33 {strides = array<i32>} : memref<8x1xf32, #tpu.memory_space<vmem>>, vector<8x1xf32>,
    %c0_27 = arith.constant 0 : index
    %c0_28 = arith.constant 0 : index
    %35 = vector.load %arg15[%c0_27, %c0_28] : memref<8x8xf32, #tpu.memory_space<vmem>>, vector<8x8xf32>
    %36 = vector.broadcast %25 : vector<8x1xf32> to vector<8x8xf32>
    %37 = arith.mulf %36, %35 : vector<8x8xf32>
    %cst_29 = arith.constant dense<0.000000e+00> : vector<8x8xf32>
    %38 = tpu.matmul %28, %17, %cst_29 {dimension_numbers = #tpu.dot_dimension_numbers<[1], [0], [0], [1], [0, 0, 1, 1], [], []>} : vector<8x8xf32>, vector<8x8xf32>, vector<8x8xf32> -> vector<8x8xf32>
    %39 = arith.addf %37, %38 : vector<8x8xf32>
    %c0_30 = arith.constant 0 : index
    %c0_31 = arith.constant 0 : index
    %40 = vector.load %arg15[%c0_30, %c0_31] : memref<8x8xf32, #tpu.memory_space<vmem>>, vector<8x8xf32>
    tpu.vector_store %arg15[%c0_30, %c0_31], %39 {strides = array<i32>} : memref<8x8xf32, #tpu.memory_space<vmem>>, vector<8x8xf32>,
    %c0_32 = arith.constant 0 : index
    %c0_33 = arith.constant 0 : index
    %41 = vector.load %arg13[%c0_32, %c0_33] : memref<8x1xf32, #tpu.memory_space<vmem>>, vector<8x1xf32>
    tpu.vector_store %arg13[%c0_32, %c0_33], %23 {strides = array<i32>} : memref<8x1xf32, #tpu.memory_space<vmem>>, vector<8x1xf32>,
    %c0_i32_34 = arith.constant 0 : i32
    %42 = arith.cmpi eq, %arg3, %c0_i32_34 : i32
    %43 = arith.extui %42 : i1 to i32
    %c0_i32_35 = arith.constant 0 : i32
    %44 = arith.cmpi ne, %43, %c0_i32_35 : i32
    scf.if %44 {
      %c0_37 = arith.constant 0 : index
      %c0_38 = arith.constant 0 : index
      %49 = vector.load %arg15[%c0_37, %c0_38] : memref<8x8xf32, #tpu.memory_space<vmem>>, vector<8x8xf32>
      %c0_39 = arith.constant 0 : index
      %c0_40 = arith.constant 0 : index
      %50 = vector.load %arg14[%c0_39, %c0_40] : memref<8x1xf32, #tpu.memory_space<vmem>>, vector<8x1xf32>
      %51 = tpu.reciprocal %50 {approx = true} : vector<8x1xf32> -> vector<8x1xf32>
      %52 = vector.broadcast %51 : vector<8x1xf32> to vector<8x8xf32>
      %53 = arith.mulf %49, %52 : vector<8x8xf32>
      %c0_41 = arith.constant 0 : index
      %c0_42 = arith.constant 0 : index
      %54 = vector.load %arg16[%c0_41, %c0_42] : memref<8x32xf32, #tpu.memory_space<vmem>>, vector<8x32xf32>
      %c0_43 = arith.constant 0 : index
      %c0_44 = arith.constant 0 : index
      %c0_45 = arith.constant 0 : index
      %55 = vector.load %arg10[%c0_43, %c0_44, %c0_45] : memref<1x8x32xf32, #tpu.memory_space<vmem>>, vector<1x8x32xf32>
      %56 = vector.shape_cast %55 : vector<1x8x32xf32> to vector<8x32xf32>
      %cst_46 = arith.constant dense<0.000000e+00> : vector<8x32xf32>
      %57 = tpu.matmul %53, %56, %cst_46 {dimension_numbers = #tpu.dot_dimension_numbers<[1], [0], [0], [1], [0, 0, 1, 1], [], []>} : vector<8x8xf32>, vector<8x32xf32>, vector<8x32xf32> -> vector<8x32xf32>
      %58 = arith.addf %54, %57 : vector<8x32xf32>
      %c0_47 = arith.constant 0 : index
      %c0_48 = arith.constant 0 : index
      %59 = vector.load %arg16[%c0_47, %c0_48] : memref<8x32xf32, #tpu.memory_space<vmem>>, vector<8x32xf32>
      tpu.vector_store %arg16[%c0_47, %c0_48], %58 {strides = array<i32>} : memref<8x32xf32, #tpu.memory_space<vmem>>, vector<8x32xf32>,
    } else {
    }
    %c3_i32 = arith.constant 3 : i32
    %45 = arith.cmpi eq, %arg2, %c3_i32 : i32
    %46 = arith.andi %42, %45 : i1
    %47 = arith.extui %46 : i1 to i32
    %c0_i32_36 = arith.constant 0 : i32
    %48 = arith.cmpi ne, %47, %c0_i32_36 : i32
    scf.if %48 {
      %c0_37 = arith.constant 0 : index
      %c0_38 = arith.constant 0 : index
      %49 = vector.load %arg16[%c0_37, %c0_38] : memref<8x32xf32, #tpu.memory_space<vmem>>, vector<8x32xf32>
      %c0_39 = arith.constant 0 : index
      %c0_40 = arith.constant 0 : index
      %c0_41 = arith.constant 0 : index
      %50 = vector.load %arg11[%c0_39, %c0_40, %c0_41] : memref<1x8x32xf32, #tpu.memory_space<vmem>>, vector<1x8x32xf32>
      %51 = vector.shape_cast %50 : vector<1x8x32xf32> to vector<8x32xf32>
      %52 = vector.shape_cast %49 : vector<8x32xf32> to vector<1x8x32xf32>
      tpu.vector_store %arg11[%c0_39, %c0_40, %c0_41], %52 {strides = array<i32>} : memref<1x8x32xf32, #tpu.memory_space<vmem>>, vector<1x8x32xf32>,
    } else {
    }
    return
  }
  func.func @transform_0(%arg0: i32, %arg1: i32, %arg2: i32, %arg3: i32) -> (i32, i32, i32) {
    %c0_i32 = arith.constant 0 : i32
    %c0_i32_0 = arith.constant 0 : i32
    return %arg0, %arg1, %c0_i32 : i32, i32, i32
  }
  func.func @transform_1(%arg0: i32, %arg1: i32, %arg2: i32, %arg3: i32) -> (i32, i32, i32) {
    %c0_i32 = arith.constant 0 : i32
    %c0_i32_0 = arith.constant 0 : i32
    return %arg0, %arg3, %c0_i32 : i32, i32, i32
  }
  func.func @transform_2(%arg0: i32, %arg1: i32, %arg2: i32, %arg3: i32) -> (i32, i32, i32) {
    %c0_i32 = arith.constant 0 : i32
    %c0_i32_0 = arith.constant 0 : i32
    return %arg0, %arg3, %c0_i32 : i32, i32, i32
  }
  func.func @transform_3(%arg0: i32, %arg1: i32, %arg2: i32, %arg3: i32) -> (i32, i32, i32) {
    %c0_i32 = arith.constant 0 : i32
    %c0_i32_0 = arith.constant 0 : i32
    %c0_i32_1 = arith.constant 0 : i32
    return %arg2, %c0_i32, %c0_i32_0 : i32, i32, i32
  }
  func.func @transform_4(%arg0: i32, %arg1: i32, %arg2: i32, %arg3: i32) -> (i32, i32, i32) {
    %c0_i32 = arith.constant 0 : i32
    %c0_i32_0 = arith.constant 0 : i32
    %c0_i32_1 = arith.constant 0 : i32
    return %arg2, %c0_i32, %c0_i32_0 : i32, i32, i32
  }
  func.func @transform_5(%arg0: i32, %arg1: i32, %arg2: i32, %arg3: i32) -> (i32, i32, i32) {
    %c0_i32 = arith.constant 0 : i32
    %c0_i32_0 = arith.constant 0 : i32
    %c0_i32_1 = arith.constant 0 : i32
    return %arg2, %c0_i32, %c0_i32_0 : i32, i32, i32
  }
  func.func @transform_6(%arg0: i32, %arg1: i32, %arg2: i32, %arg3: i32) -> (i32, i32, i32) {
    %c0_i32 = arith.constant 0 : i32
    %c0_i32_0 = arith.constant 0 : i32
    %c0_i32_1 = arith.constant 0 : i32
    return %arg2, %c0_i32, %c0_i32_0 : i32, i32, i32
  }
  func.func @transform_7(%arg0: i32, %arg1: i32, %arg2: i32, %arg3: i32) -> (i32, i32, i32) {
    %c0_i32 = arith.constant 0 : i32
    %c0_i32_0 = arith.constant 0 : i32
    return %arg0, %arg1, %c0_i32 : i32, i32, i32
  }
}

</mosaic_0001>

<bundles_post_ra>
// kernel: tpu_custom_call.1
= control target key start
LH: loop header
LB: loop body
LE: loop exit
PB: predicated region body
PF: predicated region fallthrough
CT: control target
= control target key end

     0   :  { %12 = vsyncpa [#allocation8], 0  ;;  %s1717_s0 = inlined_call_operand.vmem [shape: f32[2,8,32], index: 0, kind: input, shape index: {}]   ;;  %s1718_s1 = inlined_call_operand.vmem [shape: f32[2,8,32], index: 1, kind: input, shape index: {}]   ;;  %s1719_s2 = inlined_call_operand.vmem [shape: f32[2,8,32], index: 2, kind: input, shape index: {}]   ;;  %s1720_s3 = inlined_call_operand.vmem [shape: f32[4,32,8], index: 3, kind: input, shape index: {}]   ;;  %s1721_s4 = inlined_call_operand.vmem [shape: f32[4,32,8], index: 4, kind: input, shape index: {}]   ;;  %s1722_s5 = inlined_call_operand.vmem [shape: f32[4,32,8], index: 5, kind: input, shape index: {}]   ;;  %s1723_s6 = inlined_call_operand.vmem [shape: f32[4,8,32], index: 6, kind: input, shape index: {}]   ;;  %s1724_s7 = inlined_call_operand.hbm [shape: f32[2,8,32], index: 7, kind: output, shape index: {}]  }
   0x1   :  { %14 = vsyncpa [#allocation8 + $0x1], 0  ;;  %s1481_s24 = smov 0   ;;  %s1483_s25 = smov 0  }
   0x2   :  { %s1485_s26 = smov 0   ;;  %s1487_s27 = smov 0  }
   0x3   :  { %s1489_s28 = smov 0   ;;  %s1491_s29 = smov 0  }
   0x4   :  { %s1493_s30 = smov 0   ;;  %s1495_s8 = smov 0  }
   0x5 LB: > { %1734 = sst [smem:[#allocation10_spill]] %s1405_s24  ;;  %s1154_s9 = sadd.s32 4294967295, %s1433_s8   ;;  %s1433_s8 = sphi %s1495_s8, %s20_s8   ;;  %s1429_s30 = sphi %s1493_s30, %s1756_s30   ;;  %s1425_s29 = sphi %s1491_s29, %s1755_s29   ;;  %s1421_s28 = sphi %s1489_s28, %s1754_s28   ;;  %s1417_s27 = sphi %s1487_s27, %s1759_s27   ;;  %s1413_s26 = sphi %s1485_s26, %s1752_s26   ;;  %s1409_s25 = sphi %s1483_s25, %s1758_s25   ;;  %s1405_s24 = sphi %s1481_s24, %s1757_s24  }
   0x6   : > { %1735 = sst [smem:[#allocation11_spill]] %s1413_s26  ;;  %s1155_s10 = sadd.s32 4294967294, %s1433_s8  }
   0x7   : > { %1736 = sst [smem:[#allocation12_spill]] %s1425_s29  ;;  %s38_s11 = sadd.s32 1, %s1425_s29 }
   0x8   : > { %1737 = sst [smem:[#allocation13_spill]] %s1429_s30  ;;  %p40_p0 = scmp.ge.s32.totalorder %s38_s11, 4 }
   0x9   : > { %1738 = sst [smem:[#allocation14_spill]] %s1433_s8  ;;  %s46_s12 = sadd.s32 1, %s1429_s30 }
   0xa   : > { %p253_p1 = scmp.ne.s32.totalorder %s1413_s26, %s1409_s25  ;;  %p254_p2 = scmp.eq.s32.totalorder %s1154_s9, 7 }
   0xb   : > { %s1761_s11 = smov (%p40_p0, %s38_s11), 0  ;;  %s1763_s12 = smov (!%p40_p0, %s46_s12), %s1429_s30 }
   0xc   : > { %1739 = sst [smem:[#allocation15_spill]] %s1761_s11  ;;  %p1530_p3 = por %p254_p2, %p253_p1 }
   0xd   : > { %p259_p4 = scmp.ne.s32.totalorder %s1409_s25, %s1405_s24  ;;  %p48_p5 = scmp.ge.s32.totalorder %s1763_s12, 2 }
   0xe   : > { %p260_p6 = scmp.eq.s32.totalorder %s1155_s10, 7  ;;  %p1158_p7 = scmp.ge.s32.totalorder %s1433_s8, 1 }
   0xf   : > { %p339_p8 = scmp.lt.s32.totalorder %s1433_s8, 9  ;;  %s1765_s12 = smov (%p48_p5, %s1763_s12), 0 }
  0x10   : > { %1741 = sst [smem:[#allocation16_spill]] %s1765_s12  ;;  %p1540_p9 = por %p260_p6, %p259_p4 }
  0x11   : > { %p340_p10 = pnand %p1158_p7, %p339_p8  ;;  %s238_s15 = ssub.s32 %s1429_s30, %s1765_s12 }
  0x12   : > { %s1742_s14 = scalar_select %p1540_p9, 1, 0 }
  0x13   : > { %s243_s16 = sadd.s32 1, %s1413_s26  ;;  %p241_p11 = scmp.eq.s32.totalorder %s238_s15, 0 }
  0x14   : > { %1743 = sst [smem:[#allocation17_spill]] %s1742_s14  ;;  %343 = sbr.rel (%p340_p10) target bundleno = 1241 (0x4d9), region = 48 }
  0x15   : > { %s1548_s17 = scalar_select %p241_p11, %s1413_s26, %s243_s16  }
  0x16   : > { %s1726_s18 = sand.u32 (!%p340_p10), 1, %s1409_s25   ;;  %p406_p12 = scmp.lt.s32.totalorder (!%p340_p10), %s1421_s28, 1 }
  0x17   : > { %1744 = sst [smem:[#allocation18_spill]] %s1548_s17  ;;  %s1554_s19 = sshll.u32 (!%p340_p10), %s1726_s18, 3 }
  0x18   : > { %p427_p13 = scmp.lt.s32.totalorder (!%p340_p10), %s1417_s27, 3  ;;  %p446_p0 = scmp.eq.s32.totalorder (!%p340_p10), %s1417_s27, 0 }
  0x19   : > { %s407_s20 = scalar_select %p406_p12, %s1421_s28, 1  ;;  %vm452_vm0 = vcmask (%p446_p0), 261120   ;;  %v1435_v0 = vmov (%p446_p0), 0.0  }
  0x1a   : > { %s428_s21 = scalar_select %p427_p13, %s1417_s27, 3  ;;  %453 = vst.msk [vmem:[#allocation6] sm:$0xff] (%p446_p0), %vm452_vm0, %v1435_v0 }
  0x1b   : > { %s1560_s22 = sshll.u32 %s407_s20, 3  ;;  %s405_s18 = scalar_lea.vmem [#allocation7], %s1554_s19 }
  0x1c   : > { %s426_s30 = scalar_lea.vmem %s1719_s2, %s1560_s22  ;;  %s1183_s29 = sshll.u32 %s428_s21, 5 }
  0x1d   : > { %s431_s20 = scalar_lea.vmem %s1720_s3, %s1183_s29  ;;  %s1580_s23 = scalar_lea.vmem %s1721_s4, %s1183_s29 }
  0x1e   : > { %s1585_s8 = scalar_lea.vmem %s1722_s5, %s1183_s29  ;;  %s1169_s15 = sshll.u32 %s428_s21, 3 }
  0x1f   : > { %s1590_s11 = scalar_lea.vmem %s1723_s6, %s1169_s15  ;;  %451 = sbr.rel (!%p446_p0) target bundleno = 36 (0x24), region = 52 }
  0x24 PF: > { %v461_v1 = vld [vmem:[%s431_s20 + $0x18] sm:$0xff]  ;;  %v1436_v2 = vmov 0.0   ;;  %v460_v3 = vld [vmem:[%s431_s20 + $0x10] sm:$0xff]  ;;  %v459_v6 = vld [vmem:[%s431_s20 + $0x8] sm:$0xff]  ;;  %vm1437_vm1 = vmmov 0   ;;  %s1745_s29 = scalar_lea.vmem %s1717_s0, %s1560_s22  ;;  %vm462_vm2 = vcmask 261120   ;;  %s1746_s17 = scalar_lea.vmem %s1718_s1, %s1560_s22 }
  0x25   : > { %1209 = vmatprep.subr.mxu0 %v1436_v2  ;;  %1220 = vmatprep.subr.mxu1 %v1436_v2  ;;  %v547_v4 = vld [vmem:[%s1580_s23 + $0x18] sm:$0xff]  ;;  %v546_v5 = vld [vmem:[%s1580_s23 + $0x10] sm:$0xff]  ;;  %v545_v7 = vld [vmem:[%s1580_s23 + $0x8] sm:$0xff]  ;;  %vm537_vm3 = vcmask 64512   ;;  %vm539_vm4 = vcmask 7168   ;;  %v1438_v20 = vmov -inf  }
  0x26   : > { %1210 = vmatpush3.msra.mxu0 %v461_v1  ;;  %1221 = vmatpush3.msra.mxu1 %v547_v4  ;;  %v458_v8 = vld [vmem:[%s431_s20] sm:$0xff]  ;;  %542 = vst.msk [vmem:[#allocation5] sm:$0xff] %vm537_vm3, %v1436_v2  ;;  %v626_v18 = vld [vmem:[%s1585_s8 + $0x18] sm:$0xff]  ;;  %v625_v19 = vld [vmem:[%s1585_s8 + $0x10] sm:$0xff]  ;;  %v1439_v27 = vmov 0   ;;  %p974_p1 = scmp.eq.s32.totalorder %s1417_s27, 3 }
  0x27   : > { %1211 = vmatprep.subr.mxu0 %v1436_v2  ;;  %1222 = vmatprep.subr.mxu1 %v1436_v2  ;;  %v457_v9 = vld [vmem:[%s1745_s29] sm:$0xff]  ;;  %540 = vst.msk [vmem:[#allocation3] sm:$0xff] %vm539_vm4, %v1438_v20  ;;  %541 = vst.msk [vmem:[#allocation4] sm:$0xff] %vm539_vm4, %v1436_v2  ;;  %v624_v21 = vld [vmem:[%s1585_s8 + $0x8] sm:$0xff] }
  0x28   : > { %1212 = vmatpush3.msra.mxu0 %v460_v3  ;;  %1217 = vmatprep.mubr.msk.f32.mxu0 %vm1437_vm1, %v1436_v2  ;;  %v544_v10 = vld [vmem:[%s1580_s23] sm:$0xff] }
  0x29   : > { %1213 = vmatprep.subr.mxu0 %v1436_v2  ;;  %1223 = vmatpush3.msra.mxu1 %v546_v5  ;;  %v543_v11 = vld [vmem:[%s1746_s17] sm:$0xff] }
  0x2a   : > { %1214 = vmatpush3.msra.mxu0 %v459_v6  ;;  %1224 = vmatprep.subr.mxu1 %v1436_v2  ;;  %v623_v22 = vld [vmem:[%s1585_s8] sm:$0xff] }
  0x2b   : > { %1215 = vmatprep.subr.mxu0 %v1436_v2  ;;  %1225 = vmatpush3.msra.mxu1 %v545_v7  ;;  %v622_v23 = vld [vmem:[%s426_s30] sm:$0xff] }
  0x2c   : > { %1216 = vmatpush3.msra.mxu0 %v458_v8  ;;  %1226 = vmatprep.subr.mxu1 %v1436_v2  ;;  %v898_v41 = vld [vmem:[%s1590_s11] sm:$0xff] }
  0x2d   : > { %1218 = vmatmul.mubr.msk.f32.vlgmr.msra.gmra.mxu0 %vm462_vm2, %v457_v9  ;;  %1227 = vmatpush3.msra.mxu1 %v544_v10  ;;  %v802_v48 = vld [vmem:[#allocation5] sm:$0xff]  ;;  %v897_v57 = vld [vmem:[#allocation6] sm:$0xff] }
  0x2e   : > { %1228 = vmatprep.mubr.msk.f32.mxu1 %vm1437_vm1, %v1436_v2  ;;  %1242 = vmatprep.subr.mxu1 %v1436_v2  ;;  %v778_v28 = vld [vmem:[#allocation3] sm:$0xff]  ;;  %v794_v42 = vld [vmem:[#allocation4] sm:$0xff] }
  0x2f   : > { %1229 = vmatmul.mubr.msk.f32.vlgmr.msra.gmra.mxu1 %vm462_vm2, %v543_v11  ;;  %1231 = vmatprep.subr.mxu0 %v1436_v2 }
  0x30   : > { %1244 = vmatprep.mubr.msk.f32.mxu1 %vm1437_vm1, %v1436_v2  ;;  %1239 = vmatprep.mubr.msk.f32.mxu0 %vm1437_vm1, %v1436_v2 }
  0x31   : > { %1232 = vmatpush3.msra.mxu0 %v626_v18  ;;  %1333 = vset.pattern.permute.xlu0 %v1439_v27 }
  0x32   : > { %1233 = vmatprep.subr.mxu0 %v1436_v2  ;;  %1334 = vset.pattern.permute.xlu1 %v1439_v27 }
  0x33   : > { %1234 = vmatpush3.msra.mxu0 %v625_v19 }
  0x34   : > { %1235 = vmatprep.subr.mxu0 %v1436_v2 }
  0x35   : > { %1236 = vmatpush3.msra.mxu0 %v624_v21 }
  0x36   : > { %1237 = vmatprep.subr.mxu0 %v1436_v2 }
  0x37   : > { %1238 = vmatpush3.msra.mxu0 %v623_v22 }
  0x38   : > { %1240 = vmatmul.mubr.msk.f32.vlgmr.msra.gmra.mxu0 %vm462_vm2, %v622_v23  ;;  %1252 = vmatprep.subr.mxu0 %v1436_v2 }
  0x39   : > { %1254 = vmatprep.mubr.msk.f32.mxu0 %vm1437_vm1, %v1436_v2  ;;  %1253 = vmatpush3.msra.mxu0 %v898_v41 }
  0xed   : > { %v532_v12 = vpop.f32.mrf.mxu0 }
  0xee   : > { %v536_v13 = vmul.f32 0.35355338, %v532_v12 }
  0xef   : > { %v1219_v14 = vpop.f32.mrf.mxu0  ;;  %v618_v15 = vpop.f32.mrf.mxu1 }
  0xf0   : > { %538 = vst.msk [vmem:[#allocation2] sm:$0xff] %vm537_vm3, %v536_v13  ;;  %1243 = vmatpush3.xpose.msk.msra.mxu1 %vm537_vm3, %v618_v15 }
  0xf1   : > { %v1230_v16 = vpop.f32.mrf.mxu1  ;;  %1247 = vmatprep.subr.mxu1 %v1436_v2 }
  0xf7   : > { %v700_v17 = vld [vmem:[#allocation2] sm:$0xff] }
  0xf8   : > { %1245 = vmatmul.mubr.msk.f32.vlgmr.msra.gmra.mxu1 %vm537_vm3, %v700_v17  ;;  %v696_v32 = vpop.f32.mrf.mxu0 }
  0xf9   : > { %1249 = vmatprep.mubr.msk.f32.mxu1 %vm1437_vm1, %v1436_v2  ;;  %1248 = vmatpush3.msra.mxu1 %v696_v32 }
  0xfa   : > { %v1241_v33 = vpop.f32.mrf.mxu0 }
 0x1b8   : > { %v774_v24 = vpop.f32.mrf.mxu1 }
 0x1b9   : > { %v779_v25 = vsel %vm537_vm3, %v774_v24, -inf }
 0x1ba   : > { %780 = vmax.xlane.f32.xlu0 %v779_v25  ;;  %v1246_v26 = vpop.f32.mrf.mxu1 }
 0x243   : > { %v781_v29 = vpop.xlane.xlu0 %780 }
 0x244   : > { %v782_v30 = vmax.f32 %v778_v28, %v781_v29 }
 0x246   : > { %v783_v31 = vsub.f32 %v778_v28, %v782_v30  ;;  %884 = vst.msk [vmem:[#allocation3] sm:$0xff] %vm539_vm4, %v782_v30  ;;  %788 = vperm.xlu0 %1333, %v782_v30  }
 0x248   : > { %v784_v38 = vmul.f32 1.442695, %v783_v31 }
 0x2c1   : > { %v789_v34 = vpop.permute.xlu0 %788 }
 0x2c2   : > { %v791_v35 = vsub.f32 %v774_v24, %v789_v34 }
 0x2c4   : > { %v792_v36 = vmul.f32 1.442695, %v791_v35 }
 0x2c6   : > { %1335 = vpow2.f32 %v792_v36 }
 0x2c7   : > { %1337 = vpow2.f32 %v784_v38 }
 0x2d3   : > { %v1336_v37 = vpop.eup %1335 }
 0x2d4   : > { %1250 = vmatmul.mubr.msk.f32.vlgmr.msra.gmra.mxu1 %vm537_vm3, %v1336_v37  ;;  %v796_v39 = vsel %vm537_vm3, %v1336_v37, 0.0  ;;  %v1338_v40 = vpop.eup %1337 }
 0x2d5   : > { %797 = vadd.xlane.f32.xlu1 %v796_v39  ;;  %v795_v43 = vmul.f32 %v1338_v40, %v794_v42 }
 0x2e6   : > { %805 = vperm.xlu1 %1334, %v1338_v40  }
 0x35e   : > { %v798_v44 = vpop.xlane.xlu1 %797 }
 0x35f   : > { %v799_v45 = vadd.f32 %v798_v44, %v795_v43 }
 0x361   : > { %801 = vst.msk [vmem:[#allocation4] sm:$0xff] %vm539_vm4, %v799_v45 }
 0x362   : > { %v806_v49 = vpop.permute.xlu1 %805 }
 0x363   : > { %v808_v50 = vmul.f32 %v806_v49, %v802_v48 }
 0x368   : > { %v889_v46 = vld [vmem:[#allocation4] sm:$0xff] }
 0x369   : > { %1339 = vrcp.f32 %v889_v46 }
 0x376   : > { %v1340_v47 = vpop.eup %1339 }
 0x377   : > { %893 = vperm.xlu1 %1334, %v1340_v47  }
 0x394   : > { %v878_v51 = vpop.f32.mrf.mxu1 }
 0x395   : > { %v882_v52 = vadd.f32 %v878_v51, %v808_v50 }
 0x396   : > { %v1251_v53 = vpop.f32.mrf.mxu1 }
 0x397   : > { %883 = vst.msk [vmem:[#allocation5] sm:$0xff] %vm537_vm3, %v882_v52 }
 0x39e   : > { %v888_v55 = vld [vmem:[#allocation5] sm:$0xff] }
 0x3f2   : > { %v894_v54 = vpop.permute.xlu1 %893 }
 0x3f3   : > { %v896_v56 = vmul.f32 %v894_v54, %v888_v55 }
 0x3f5   : > { %1255 = vmatmul.mubr.msk.f32.vlgmr.msra.gmra.mxu0 %vm537_vm3, %v896_v56 }
 0x4b4   : > { %978 = sbr.rel (!%p974_p1) target bundleno = 1217 (0x4c1), region = 64 }
 0x4b5   : > { %v968_v58 = vpop.f32.mrf.mxu0 }
 0x4b6   : > { %v972_v59 = vadd.f32 %v968_v58, %v897_v57 }
 0x4b7   : > { %v1256_v60 = vpop.f32.mrf.mxu0 }
 0x4b8   : > { %973 = vst.msk [vmem:[#allocation6] sm:$0xff] %vm462_vm2, %v972_v59 }
 0x4bf   : > { %v979_v61 = vld [vmem:[#allocation6] sm:$0xff] }
 0x4c0   : > { %980 = vst.msk [vmem:[%s405_s18] sm:$0xff] %vm462_vm2, %v979_v61 }
 0x4c1 PF: > { %s1180_s30 = sshll.u32 %s1421_s28, 7  ;;  %s996_s20 = sshll.u32 %s405_s18, 4  ;;  %s997_s20 = int_to_ptr.vmem [resolvable:$true] %s996_s20 }
 0x4c2   : > { %s994_s22 = scalar_lea.hbm %s1724_s7, %s1180_s30  ;;  %s1747_s23 = sand.u32 1, %s1409_s25  }
 0x4c3   : > { %s982_s9 = scalar_lea.sflag [#allocation8], %s1747_s23  ;;  %s1341_s15 = scalar_lea.vmem %s997_s20, 128 }
 0x4c4   : > { %p1342_p2 = scmp.ne.s32.totalorder %s997_s20, %s1341_s15  ;;  %s1440_s16 = smov [#allocation7]  }
 0x4c5   : > { %s1345_s11 = sshll.u32 %s1440_s16, 4  ;;  %s1346_s11 = int_to_ptr.vmem [resolvable:$false] %s1345_s11 }
 0x4c6   : > { %p1343_p4 = pnand %p1342_p2, %p1530_p3  ;;  %s1347_s24 = scalar_lea.vmem %s1346_s11, 256 }
 0x4c7   : > { %p1348_p6 = scmp.lt.s32.totalorder %s997_s20, %s1346_s11  ;;  %p1349_p7 = scmp.lt.s32.totalorder %s1347_s24, %s1341_s15 }
 0x4c8   : > { %p1344_p5 = pneg %p1343_p4 }
 0x4c9   : > { %p1350_p8 = por %p1349_p7, %p1348_p6 }
 0x4cb   : > { %p1351_p10 = pnand %p1350_p8, %p1344_p5 }
 0x4cd   : > { %1354 = shalt.err (!%p1351_p10)
}
 0x4ce   : > { %s1355_s28 = scalar_lea.hbm %s994_s22, 128  ;;  %s1359_s26 = scalar_lea.hbm %s1724_s7, 256 }
 0x4cf   : > { %p1356_p11 = scmp.ne.s32.totalorder %s994_s22, %s1355_s28  ;;  %p1360_p0 = scmp.lt.s32.totalorder %s994_s22, %s1724_s7 }
 0x4d0   : > { %p1361_p1 = scmp.lt.s32.totalorder %s1359_s26, %s1355_s28 }
 0x4d1   : > { %p1357_p12 = pnand %p1356_p11, %p1530_p3 }
 0x4d2   : > { %p1362_p2 = por %p1361_p1, %p1360_p0 }
 0x4d3   : > { %p1358_p13 = pneg %p1357_p12 }
 0x4d5   : > { %p1363_p4 = pnand %p1362_p2, %p1358_p13 }
 0x4d7   : > { %1366 = shalt.err (!%p1363_p4)
}
 0x4d8   : > { %1257 = dma.vmem_to_hbm [thread:$0]  (%p1530_p3), %s997_s20, 128, %s994_s22, %s982_s9  }
 0x4d9 PF: > { %s1748_s14 = sld [smem:[#allocation14_spill]] }
 0x4da   : > { %s1749_s17 = sld [smem:[#allocation10_spill]] }
 0x4df   : > { %p1263_p5 = scmp.ge.s32.totalorder %s1748_s14, 2 }
 0x4e0   : > { %s1008_s10 = sand.u32 1, %s1749_s17  }
 0x4e1   : > { %p1260_p6 = pnand %p1263_p5, %p1540_p9  ;;  %s1009_s30 = scalar_lea.sflag [#allocation8], %s1008_s10 }
 0x4e3   : > { %p1261_p7 = pneg %p1260_p6 }
 0x4e5   : > { %1400 = dma.done.wait (%p1261_p7), %s1009_s30, 128  }
 0x4e6   : > { %1402 = vsyncadd (%p1261_p7), %s1009_s30, 4294967168  ;;  %s20_s8 = sadd.s32 1, %s1748_s14   ;;  %s1751_s27 = sld [smem:[#allocation11_spill]] }
 0x4e7   : > { %p17_p8 = scmp.ge.s32.totalorder %s20_s8, 10   ;;  %s1752_s26 = sld [smem:[#allocation18_spill]] }
 0x4e8   : > { %s1753_s13 = sld [smem:[#allocation12_spill]]  ;;  %s1757_s24 = smov %s1409_s25 }
 0x4e9   : > { %s1754_s28 = sld [smem:[#allocation13_spill]] }
 0x4ea   : > { %s1755_s29 = sld [smem:[#allocation15_spill]]  ;;  %19 = sbr.rel (!%p17_p8) target bundleno = 5 (0x5), region = 117 }
 0x4eb   : > { %s1756_s30 = sld [smem:[#allocation16_spill]] }
 0x4ec   : > { %s1758_s25 = smov %s1751_s27 }
 0x4ee   : > { %s1759_s27 = smov %s1753_s13 }
 0x4ef   :  { %1014 = vsyncpa [#allocation8], 1 }
 0x4f0   :  { %1016 = vsyncpa [#allocation8 + $0x1], 1 }

</bundles_post_ra>
